<compile_context>
chip_gen: v6e
topology: v6e:2x2x1
jax: 0.10.0
libtpu: 0.0.40
codegen_flags: <defaults>
</compile_context>

<pallas_src>
import jax
import jax.numpy as jnp
from jax.experimental import pallas as pl
from jax.experimental.pallas import tpu as pltpu


# ------------------------------- kernels ------------------------------------

def _residual_conv1x1_ncl_kernel(x_ref, w_ref, b_ref, o_ref):
    # NCL layout, batch squeezed.  x_ref: (C, tl)  w_ref: (C, C)
    # b_ref: (C, 1)  o_ref: (C, tl)
    x = x_ref[...]
    y = jnp.dot(w_ref[...], x, preferred_element_type=jnp.float32)   # 1x1 conv
    o_ref[...] = (y + b_ref[...] + x).astype(o_ref.dtype)            # fn(x) + x


def _residual_conv1x1_rows_kernel(x_ref, wt_ref, b_ref, o_ref):
    # Channels-in-lanes layout.  x_ref: (tm, C)  wt_ref: (C, C) = W^T
    # b_ref: (1, C)  o_ref: (tm, C)
    x = x_ref[...]
    y = jnp.dot(x, wt_ref[...], preferred_element_type=jnp.float32)  # 1x1 conv
    o_ref[...] = (y + b_ref[...] + x).astype(o_ref.dtype)            # fn(x) + x


# ------------------------------- helpers ------------------------------------

def _round_up(x, m):
    return ((x + m - 1) // m) * m


def _vmem_capacity_bytes():
    try:
        return int(pltpu.get_tpu_info().vmem_capacity_bytes)
    except Exception:
        return 64 << 20  # conservative: v7x has 64 MiB VMEM per TensorCore


def _vmem_limit_bytes(live_bytes):
    # Cover everything live plus slack; stay well under v7x's 64 MiB physical,
    # and never below v5e's 16 MiB scoped default.
    return int(min(max(live_bytes + (4 << 20), 16 << 20), 48 << 20))


def _resident_spec(block_shape, index_map):
    """Single-buffered BlockSpec for grid-constant operands (weight / bias)."""
    try:
        return pl.BlockSpec(block_shape, index_map, pipeline_mode=pl.Buffered(1))
    except Exception:  # older jax without pipeline_mode: default double-buffer
        return pl.BlockSpec(block_shape, index_map)


def _pick_length_tile(C, L, dtype_bytes, tile_budget_bytes, want_two_l_tiles):
    """Lane-dense length tile: a multiple of 128, or the full extent."""
    if L <= 128:
        return L                                  # full-extent block is legal
    # Bandwidth saturates around 512-1024 lanes, but with small C raise the
    # cap so one step still moves >= ~2 MiB (read + write).
    per_lane_bytes = 2 * C * dtype_bytes
    lane_cap = max(1024, _round_up((2 << 20) // per_lane_bytes, 128))
    lane_cap = min(lane_cap, 8192)
    max_by_vmem = tile_budget_bytes // (4 * C * dtype_bytes)  # 2 bufs x (in+out)
    max_tl = max(128, min(lane_cap, max_by_vmem, L))
    max_tl = (max_tl // 128) * 128
    best = None
    for tl in range(128, max_tl + 1, 128):        # prefer an exact divisor
        if L % tl == 0:
            best = tl
    if best is None:
        best = max_tl        # ragged last block: cdiv grid + masked last store
    if want_two_l_tiles and best >= L:
        best = max(128, ((L // 2) // 128) * 128)  # feed both v7x TensorCores
    return best


def _pick_row_tile(rows, C, dtype_bytes, tile_budget_bytes):
    """Row tile for the (B*L, C) layout: multiple of 8, or the full extent."""
    if rows <= 8:
        return rows
    max_by_vmem = max(8, tile_budget_bytes // (4 * C * dtype_bytes))
    cap = min(rows, 1024, (max_by_vmem // 8) * 8)
    best = rows                                   # full extent is always legal
    for tm in range(8, cap + 1, 8):
        if rows % tm == 0:
            best = tm
    if best >= rows and rows % 2 == 0 and (rows // 2) % 8 == 0:
        best = rows // 2                          # keep >= 2 steps (megacore)
    return best


# ------------------------------- wrapper ------------------------------------

def residual_forward(x_ncl, w, b):
    """Residual around a 1x1 Conv1d: returns conv1x1(x) + x.

    x_ncl: (B, C, L)   w: (C, C) 1x1-conv weight   b: (C,) conv bias
    """
    B, C, L = x_ncl.shape
    dtype_bytes = jnp.dtype(x_ncl.dtype).itemsize
    w_bytes = C * C * jnp.dtype(w.dtype).itemsize
    cap = _vmem_capacity_bytes()
    tile_budget = min(cap // 4, 24 << 20)   # budget for double-buffered x/out tiles

    if L >= 128:
        # ---- main branch: keep NCL layout, L in the lane dimension ----------
        tl = _pick_length_tile(C, L, dtype_bytes, tile_budget,
                               want_two_l_tiles=(B == 1))
        live = 4 * C * tl * dtype_bytes + 2 * w_bytes
        return pl.pallas_call(
            _residual_conv1x1_ncl_kernel,
            out_shape=jax.ShapeDtypeStruct((B, C, L), x_ncl.dtype),
            grid_spec=pltpu.PrefetchScalarGridSpec(
                num_scalar_prefetch=0,
                grid=(B, pl.cdiv(L, tl)),
                in_specs=[
                    pl.BlockSpec((None, C, tl), lambda i, j: (i, 0, j)),
                    _resident_spec((C, C), lambda i, j: (0, 0)),
                    _resident_spec((C, 1), lambda i, j: (0, 0)),
                ],
                out_specs=pl.BlockSpec((None, C, tl), lambda i, j: (i, 0, j)),
            ),
            compiler_params=pltpu.CompilerParams(
                dimension_semantics=("parallel", "parallel"),
                vmem_limit_bytes=_vmem_limit_bytes(live)),
        )(x_ncl, w, b.reshape(C, 1))

    # ---- small-L branch: present (B*L, C) so C sits in the lane dimension ----
    # TODO(synk): at truly tiny sizes (the demo shapes) a standalone pallas_call
    # is pure launch overhead; in the real Unet this residual is fused into the
    # surrounding block.
    rows = B * L
    x2 = jnp.transpose(x_ncl, (0, 2, 1)).reshape(rows, C)
    tm = _pick_row_tile(rows, C, dtype_bytes, tile_budget)
    live = 4 * tm * C * dtype_bytes + 2 * w_bytes
    out2 = pl.pallas_call(
        _residual_conv1x1_rows_kernel,
        out_shape=jax.ShapeDtypeStruct((rows, C), x_ncl.dtype),
        grid_spec=pltpu.PrefetchScalarGridSpec(
            num_scalar_prefetch=0,
            grid=(pl.cdiv(rows, tm),),
            in_specs=[
                pl.BlockSpec((tm, C), lambda i: (i, 0)),
                _resident_spec((C, C), lambda i: (0, 0)),
                _resident_spec((1, C), lambda i: (0, 0)),
            ],
            out_specs=pl.BlockSpec((tm, C), lambda i: (i, 0)),
        ),
        compiler_params=pltpu.CompilerParams(
            dimension_semantics=("parallel",),
            vmem_limit_bytes=_vmem_limit_bytes(live)),
    )(x2, jnp.transpose(w), b.reshape(1, C))
    return jnp.transpose(out2.reshape(B, L, C), (0, 2, 1))


# --------------------------------- demo --------------------------------------

if __name__ == "__main__":
    key = jax.random.PRNGKey(0)
    kw, kb, kx1, kx2 = jax.random.split(key, 4)

    C = 32
    w = jax.random.normal(kw, (C, C), dtype=jnp.float32) * 0.1   # 1x1 conv weight
    b = jax.random.normal(kb, (C,), dtype=jnp.float32) * 0.1     # conv bias

    def ref_fn(x):
        y = jnp.einsum("oc,bcl->bol", w, x, precision=jax.lax.Precision.HIGHEST)
        return y + b[None, :, None] + x

    # small-L regime -> channels-in-lanes branch
    x_small = jax.random.normal(kx1, (2, C, 16), dtype=jnp.float32)
    out_small = jax.block_until_ready(residual_forward(x_small, w, b))
    assert out_small.shape == x_small.shape
    assert jnp.allclose(out_small, ref_fn(x_small), atol=1e-3, rtol=1e-3)

    # regular regime -> NCL branch (length in lanes)
    x_big = jax.random.normal(kx2, (2, C, 256), dtype=jnp.float32)
    out_big = jax.block_until_ready(residual_forward(x_big, w, b))
    assert out_big.shape == x_big.shape
    assert jnp.allclose(out_big, ref_fn(x_big), atol=1e-3, rtol=1e-3)

    print("KERNEL_OK")
</pallas_src>

<mosaic_0001>
module attributes {stable_mosaic.version = 11 : i64} {
  func.func @_residual_conv1x1_rows_kernel(%arg0: i32, %arg1: memref<16x32xf32, #tpu.memory_space<vmem>>, %arg2: memref<32x32xf32, #tpu.memory_space<vmem>>, %arg3: memref<1x32xf32, #tpu.memory_space<vmem>>, %arg4: memref<16x32xf32, #tpu.memory_space<vmem>>) attributes {dimension_semantics = [#tpu.dimension_semantics<parallel>], iteration_bounds = array<i64: 2>, scalar_prefetch = 0 : i64, scratch_operands = 0 : i64, tpu.core_type = #tpu.core_type<tc>, window_params = [{transform_indices = @transform_0, window_bounds = array<i64: 16, 32>}, {pipeline_mode = #tpu.pipeline_mode<synchronous>, transform_indices = @transform_1, window_bounds = array<i64: 32, 32>}, {pipeline_mode = #tpu.pipeline_mode<synchronous>, transform_indices = @transform_2, window_bounds = array<i64: 1, 32>}, {transform_indices = @transform_3, window_bounds = array<i64: 16, 32>}]} {
    %c0 = arith.constant 0 : index
    %c0_0 = arith.constant 0 : index
    %0 = vector.load %arg1[%c0, %c0_0] : memref<16x32xf32, #tpu.memory_space<vmem>>, vector<16x32xf32>
    %c0_1 = arith.constant 0 : index
    %c0_2 = arith.constant 0 : index
    %1 = vector.load %arg2[%c0_1, %c0_2] : memref<32x32xf32, #tpu.memory_space<vmem>>, vector<32x32xf32>
    %cst = arith.constant dense<0.000000e+00> : vector<16x32xf32>
    %2 = tpu.matmul %0, %1, %cst {dimension_numbers = #tpu.dot_dimension_numbers<[1], [0], [0], [1], [0, 0, 1, 1], [], []>} : vector<16x32xf32>, vector<32x32xf32>, vector<16x32xf32> -> vector<16x32xf32>
    %c0_3 = arith.constant 0 : index
    %c0_4 = arith.constant 0 : index
    %3 = vector.load %arg3[%c0_3, %c0_4] : memref<1x32xf32, #tpu.memory_space<vmem>>, vector<1x32xf32>
    %4 = vector.broadcast %3 : vector<1x32xf32> to vector<16x32xf32>
    %5 = arith.addf %2, %4 : vector<16x32xf32>
    %6 = arith.addf %5, %0 : vector<16x32xf32>
    %c0_5 = arith.constant 0 : index
    %c0_6 = arith.constant 0 : index
    %7 = vector.load %arg4[%c0_5, %c0_6] : memref<16x32xf32, #tpu.memory_space<vmem>>, vector<16x32xf32>
    tpu.vector_store %arg4[%c0_5, %c0_6], %6 {strides = array<i32>} : memref<16x32xf32, #tpu.memory_space<vmem>>, vector<16x32xf32>,
    return
  }
  func.func @transform_0(%arg0: i32) -> (i32, i32) {
    %c0_i32 = arith.constant 0 : i32
    %c0_i32_0 = arith.constant 0 : i32
    return %arg0, %c0_i32 : i32, i32
  }
  func.func @transform_1(%arg0: i32) -> (i32, i32) {
    %c0_i32 = arith.constant 0 : i32
    %c0_i32_0 = arith.constant 0 : i32
    %c0_i32_1 = arith.constant 0 : i32
    return %c0_i32, %c0_i32_0 : i32, i32
  }
  func.func @transform_2(%arg0: i32) -> (i32, i32) {
    %c0_i32 = arith.constant 0 : i32
    %c0_i32_0 = arith.constant 0 : i32
    %c0_i32_1 = arith.constant 0 : i32
    return %c0_i32, %c0_i32_0 : i32, i32
  }
  func.func @transform_3(%arg0: i32) -> (i32, i32) {
    %c0_i32 = arith.constant 0 : i32
    %c0_i32_0 = arith.constant 0 : i32
    return %arg0, %c0_i32 : i32, i32
  }
}

</mosaic_0001>

<bundles_post_ra>
// kernel: tpu_custom_call.1
= control target key start
LH: loop header
LB: loop body
LE: loop exit
PB: predicated region body
PF: predicated region fallthrough
CT: control target
= control target key end

     0   :  { %8 = vsyncpa [#allocation3], 0  ;;  %s842_s0 = inlined_call_operand.hbm [shape: f32[32,32], index: 0, kind: input, shape index: {}]   ;;  %s843_s1 = inlined_call_operand.hbm [shape: f32[32,32], index: 1, kind: input, shape index: {}]   ;;  %s844_s2 = inlined_call_operand.vmem [shape: f32[1,32], index: 2, kind: input, shape index: {}]   ;;  %s845_s3 = inlined_call_operand.hbm [shape: f32[32,32], index: 3, kind: output, shape index: {}]  }
   0x1   :  { %10 = vsyncpa [#allocation3 + $0x1], 0 }
   0x2   :  { %11 = vsyncpa [#allocation6], 0 }
   0x3   :  { %12 = vsyncpa [#allocation4], 0 }
   0x4   :  { %14 = vsyncpa [#allocation4 + $0x1], 0  ;;  %s652_s12 = smov 0   ;;  %s654_s13 = smov 0  }
   0x5   :  { %s656_s14 = smov 0   ;;  %s658_s15 = smov 0  }
   0x6 LB: > { %s673_s16 = sadd.s32 4294967295, %s623_s15   ;;  %s402_s17 = sadd.s32 4294967294, %s623_s15   ;;  %s623_s15 = sphi %s658_s15, %s867_s15   ;;  %s619_s14 = sphi %s656_s14, %s866_s14   ;;  %s615_s13 = sphi %s654_s13, %s865_s13   ;;  %s611_s12 = sphi %s652_s12, %s864_s12  }
   0x7   : > { %p40_p0 = scmp.ne.s32.totalorder %s615_s13, %s611_s12  ;;  %p846_p1 = scmp.eq.s32.totalorder %s673_s16, 0 }
   0x8   : > { %p112_p3 = scmp.eq.s32.totalorder %s402_s17, 1  ;;  %p403_p5 = scmp.ge.s32.totalorder %s623_s15, 1 }
   0x9   : > { %p682_p4 = por %p846_p1, %p40_p0  ;;  %p119_p7 = scmp.lt.s32.totalorder %s623_s15, 3 }
   0xa   : > { %p687_p6 = por %p112_p3, %p40_p0  ;;  %s625_s21 = smov [#allocation5]  }
   0xb   : > { %s850_s18 = scalar_select %p682_p4, 1, 0 }
   0xc   : > { %s851_s19 = scalar_select %p687_p6, 1, 0 }
   0xd   : > { %p692_p8 = pnand %p403_p5, %p119_p7  ;;  %s131_s22 = sshll.u32 %s625_s21, 4  ;;  %s132_s22 = int_to_ptr.vmem [resolvable:$true] %s131_s22 }
   0xe   : > { %s706_s24 = sadd.s32 1, %s623_s15   ;;  %s27_s25 = sadd.s32 1, %s619_s14 }
   0xf   : > { %s852_s20 = scalar_select %p692_p8, 1, 0 }
  0x10   : > { %p448_p9 = pneg %p692_p8  ;;  %s24_s26 = ssub.s32 %s623_s15, %s706_s24 }
  0x11   : > { %s512_s27 = scalar_lea.vmem %s132_s22, 512  ;;  %p520_p5 = scmp.lt.s32.totalorder %s132_s22, %s132_s22 }
  0x12   : > { %p701_p11 = pnand %p448_p9, %p846_p1  ;;  %p513_p13 = scmp.ne.s32.totalorder %s132_s22, %s512_s27 }
  0x13   : > { %p521_p7 = scmp.lt.s32.totalorder %s512_s27, %s512_s27 }
  0x14   : > { %p503_p12 = pneg %p701_p11 }
  0x15   : > { %p522_p10 = por %p521_p7, %p520_p5 }
  0x16   : > { %p515_p0 = pnand %p513_p13, %p503_p12 }
  0x18   : > { %p516_p3 = pneg %p515_p0 }
  0x1a   : > { %p523_p2 = pnand %p522_p10, %p516_p3 }
  0x1c   : > { %526 = shalt.err (!%p523_p2)
}
  0x1d   : > { %s626_s28 = smov 128   ;;  %s627_s29 = smov 8  }
  0x1e   : > { %451 = dma.hbm_to_vmem [thread:$0]  (!%p701_p11), %s843_s1, 512, %s132_s22, [#allocation6], %s626_s28, %s626_s28, %s627_s29  }
  0x1f   : > { %p25_p2 = scmp.eq.s32.totalorder %s24_s26, 0  ;;  %p34_p9 = scmp.ne.s32.totalorder %s619_s14, %s615_s13 }
  0x20   : > { %p35_p10 = scmp.eq.s32.totalorder %s623_s15, 0  ;;  %p461_p12 = scmp.lt.s32.totalorder %s623_s15, 2 }
  0x21   : > { %s726_s5 = scalar_select %p25_p2, %s619_s14, %s27_s25  }
  0x22   : > { %p36_p13 = por %p35_p10, %p34_p9  ;;  %p854_p0 = scmp.eq.s32.totalorder %s673_s16, 1 }
  0x23   : > { %s148_s7 = sand.u32 1, %s619_s14   ;;  %s421_s8 = sshll.u32 %s623_s15, 8 }
  0x24   : > { %p730_p3 = por %p854_p0, %p34_p9  ;;  %s406_s9 = sshll.u32 %s148_s7, 4 }
  0x25   : > { %s739_s17 = scalar_lea.hbm %s842_s0, %s421_s8  ;;  %s152_s21 = scalar_lea.vmem [#allocation2], %s406_s9 }
  0x26   : > { %s855_s6 = scalar_select %p730_p3, 1, 0 }
  0x27   : > { %s159_s22 = sshll.u32 %s152_s21, 4  ;;  %p741_p11 = pnand %p461_p12, %p36_p13  ;;  %s745_s22 = int_to_ptr.vmem [resolvable:$true] %s159_s22 }
  0x28   : > { %s747_s25 = scalar_lea.sflag [#allocation3], %s148_s7  ;;  %s527_s26 = scalar_lea.hbm %s739_s17, 256 }
  0x29   : > { %p528_p5 = scmp.ne.s32.totalorder %s739_s17, %s527_s26  ;;  %p529_p7 = pneg %p741_p11 }
  0x2a   : > { %s532_s4 = scalar_lea.hbm %s842_s0, 512  ;;  %p533_p10 = scmp.lt.s32.totalorder %s739_s17, %s842_s0 }
  0x2b   : > { %p530_p2 = pnand %p529_p7, %p528_p5  ;;  %p534_p12 = scmp.lt.s32.totalorder %s532_s4, %s527_s26 }
  0x2d   : > { %p531_p9 = pneg %p530_p2  ;;  %p535_p13 = por %p534_p12, %p533_p10 }
  0x2f   : > { %p536_p0 = pnand %p535_p13, %p531_p9 }
  0x31   : > { %539 = shalt.err (!%p536_p0)
}
  0x32   : > { %s540_s7 = scalar_lea.vmem %s745_s22, 256  ;;  %s628_s10 = smov [#allocation2]  }
  0x33   : > { %p541_p1 = scmp.ne.s32.totalorder %s745_s22, %s540_s7  ;;  %s545_s11 = sshll.u32 %s628_s10, 4  ;;  %s546_s11 = int_to_ptr.vmem [resolvable:$false] %s545_s11 }
  0x34   : > { %s547_s21 = scalar_lea.vmem %s546_s11, 512  ;;  %p548_p2 = scmp.lt.s32.totalorder %s745_s22, %s546_s11 }
  0x35   : > { %p543_p6 = pnand %p541_p1, %p529_p7  ;;  %p549_p3 = scmp.lt.s32.totalorder %s547_s21, %s540_s7 }
  0x37   : > { %p544_p5 = pneg %p543_p6  ;;  %p550_p4 = por %p549_p3, %p548_p2 }
  0x39   : > { %p551_p8 = pnand %p550_p4, %p544_p5 }
  0x3b   : > { %554 = shalt.err (!%p551_p8)
}
  0x3c   : > { %455 = dma.hbm_to_vmem [thread:$0]  (!%p741_p11), %s739_s17, 256, %s745_s22, %s747_s25, %s626_s28, %s626_s28, %s627_s29  }
  0x3d   : > { %p857_p1 = scmp.ne.s32.totalorder %s852_s20, 0 }
  0x3e   : > { %s774_s26 = sand.u32 (!%p857_p1), 1, %s615_s13   ;;  %p858_p4 = scmp.ne.s32.totalorder (!%p857_p1), %s850_s18, 0 }
  0x3f   : > { %171 = sbr.rel (%p857_p1) target bundleno = 294 (0x126), region = 32  ;;  %s410_s27 = sshll.u32 (!%p857_p1), %s774_s26, 4 }
  0x40   : > { %s174_s30 = scalar_lea.sflag (!%p857_p1), [#allocation3], %s774_s26  ;;  %s177_s4 = scalar_lea.vmem (!%p857_p1), [#allocation2], %s410_s27 }
  0x44   : > { %598 = dma.done.wait (%p858_p4), %s174_s30, 256  }
  0x45   : > { %600 = vsyncadd (%p858_p4), %s174_s30, 4294967040  ;;  %p859_p6 = scmp.eq.s32.totalorder %s673_s16, 0 }
  0x47   : > { %602 = dma.done.wait (%p859_p6), [#allocation6], 512   ;;  %p860_p8 = pmov %p859_p6 }
  0x48   : > { %vm219_vm0 = vcmask 261120   ;;  %v211_v0 = vld [vmem:[#allocation5 + $0x18] sm:$0xff]  ;;  %v210_v1 = vld [vmem:[#allocation5 + $0x10] sm:$0xff]  ;;  %v209_v3 = vld [vmem:[#allocation5 + $0x8] sm:$0xff]  ;;  %s422_s28 = sshll.u32 %s673_s16, 8  ;;  %s203_s29 = scalar_lea.vmem [#allocation7], %s410_s27 }
  0x49   : > { %604 = vsyncadd (%p860_p8), [#allocation6], 4294966784  ;;  %429 = vmatprep.subr.mxu0 %v211_v0  ;;  %v206_v2 = vld [vmem:[%s177_s4] sm:$0xff]  ;;  %v207_v5 = vld [vmem:[%s177_s4 + $0x8] sm:$0xff]  ;;  %s319_s17 = sshll.u32 %s203_s29, 4  ;;  %s795_s25 = scalar_lea.hbm %s845_s3, %s422_s28  ;;  %s797_s17 = int_to_ptr.vmem [resolvable:$true] %s319_s17 }
  0x4a   : > { %430 = vmatpush3.msra.mxu0 %v211_v0  ;;  %437 = vmatprep.mubr.msk.f32.mxu0 %vm219_vm0, %v206_v2  ;;  %v208_v4 = vld [vmem:[#allocation5] sm:$0xff]  ;;  %s306_s16 = scalar_lea.sflag [#allocation4], %s774_s26  ;;  %s555_s8 = scalar_lea.vmem %s797_s17, 256 }
  0x4b   : > { %431 = vmatprep.subr.mxu0 %v210_v1  ;;  %v413_v6 = vld [vmem:[%s844_s2] ss:$0 sm:$0xff]  ;;  %p556_p3 = scmp.ne.s32.totalorder %s797_s17, %s555_s8  ;;  %p861_p11 = scmp.ne.s32.totalorder %s855_s6, 0 }
  0x4c   : > { %432 = vmatpush3.msra.mxu0 %v210_v1  ;;  %s629_s9 = smov [#allocation7]  }
  0x4d   : > { %433 = vmatprep.subr.mxu0 %v209_v3  ;;  %p557_p7 = pnand %p556_p3, %p861_p11  ;;  %s559_s7 = sshll.u32 %s629_s9, 4  ;;  %s560_s7 = int_to_ptr.vmem [resolvable:$false] %s559_s7 }
  0x4e   : > { %434 = vmatpush3.msra.mxu0 %v209_v3  ;;  %s561_s10 = scalar_lea.vmem %s560_s7, 512  ;;  %p562_p10 = scmp.lt.s32.totalorder %s797_s17, %s560_s7 }
  0x4f   : > { %435 = vmatprep.subr.mxu0 %v208_v4  ;;  %p558_p9 = pneg %p557_p7  ;;  %p563_p12 = scmp.lt.s32.totalorder %s561_s10, %s555_s8 }
  0x50   : > { %436 = vmatpush3.msra.mxu0 %v208_v4 }
  0x51   : > { %438 = vmatmul.mubr.msk.f32.vlgmr.msra.gmra.mxu0 %vm219_vm0, %v207_v5  ;;  %p564_p13 = por %p563_p12, %p562_p10 }
  0x53   : > { %p565_p0 = pnand %p564_p13, %p558_p9 }
 0x111   : > { %v439_v7 = vpop.f32.mrf.mxu0 }
 0x112   : > { %v298_v8 = vadd.f32 %v439_v7, %v413_v6 }
 0x113   : > { %v292_v9 = vpop.f32.mrf.mxu0 }
 0x114   : > { %v302_v10 = vadd.f32 %v298_v8, %v207_v5  ;;  %v293_v11 = vadd.f32 %v413_v6, %v292_v9 }
 0x116   : > { %304 = vst.msk [vmem:[%s203_s29 + $0x8] sm:$0xff] %vm219_vm0, %v302_v10  ;;  %v301_v12 = vadd.f32 %v293_v11, %v206_v2 }
 0x118   : > { %303 = vst.msk [vmem:[%s203_s29] sm:$0xff] %vm219_vm0, %v301_v12 }
 0x119   : > { %568 = shalt.err (!%p565_p0)
}
 0x11a   : > { %s569_s11 = scalar_lea.hbm %s795_s25, 256  ;;  %s573_s30 = scalar_lea.hbm %s845_s3, 512 }
 0x11b   : > { %p570_p5 = scmp.ne.s32.totalorder %s795_s25, %s569_s11  ;;  %p574_p4 = scmp.lt.s32.totalorder %s795_s25, %s845_s3 }
 0x11c   : > { %p575_p6 = scmp.lt.s32.totalorder %s573_s30, %s569_s11 }
 0x11d   : > { %p571_p2 = pnand %p570_p5, %p861_p11 }
 0x11e   : > { %p576_p8 = por %p575_p6, %p574_p4 }
 0x11f   : > { %p572_p1 = pneg %p571_p2 }
 0x121   : > { %p577_p3 = pnand %p576_p8, %p572_p1 }
 0x123   : > { %580 = shalt.err (!%p577_p3)
}
 0x124   : > { %s630_s20 = smov 128   ;;  %s631_s28 = smov 8  }
 0x125   : > { %446 = dma.vmem_to_hbm [thread:$0]  (%p861_p11), %s797_s17, 256, %s795_s25, %s306_s16, %s630_s20, %s630_s20, %s631_s28  }
 0x126 PF: > { %s334_s29 = sand.u32 1, %s611_s12   ;;  %p862_p7 = scmp.ne.s32.totalorder %s851_s19, 0 }
 0x127   : > { %p863_p9 = scmp.ge.s32.totalorder %s623_s15, 2  ;;  %s335_s22 = scalar_lea.sflag [#allocation4], %s334_s29 }
 0x129   : > { %p457_p10 = pnand %p863_p9, %p862_p7 }
 0x12b   : > { %p458_p12 = pneg %p457_p10 }
 0x12d   : > { %606 = dma.done.wait (%p458_p12), %s335_s22, 256  }
 0x12e   : > { %608 = vsyncadd (%p458_p12), %s335_s22, 4294967040  ;;  %p17_p13 = scmp.ge.s32.totalorder %s706_s24, 4   ;;  %s864_s12 = smov %s615_s13 }
 0x12f   : > { %s865_s13 = smov %s619_s14  ;;  %s866_s14 = smov %s726_s5 }
 0x130   : > { %s867_s15 = smov %s706_s24  ;;  %19 = sbr.rel (!%p17_p13) target bundleno = 6 (0x6), region = 81 }
 0x135   :  { %340 = vsyncpa [#allocation3], 1 }
 0x136   :  { %342 = vsyncpa [#allocation3 + $0x1], 1 }
 0x137   :  { %343 = vsyncpa [#allocation6], 1 }
 0x138   :  { %344 = vsyncpa [#allocation4], 1 }
 0x139   :  { %346 = vsyncpa [#allocation4 + $0x1], 1 }

</bundles_post_ra>
